<compile_context>
chip_gen: v7x
topology: tpu7x:2x2x1
jax: 0.10.0
libtpu: 0.0.40
codegen_flags: <defaults>
</compile_context>

<pallas_src>
import math

import jax
import jax.numpy as jnp
from jax.experimental import pallas as pl
from jax.experimental.pallas import tpu as pltpu

# (fan_in, fan_out) of the five Linear layers, in execution order.
LAYER_DIMS = [(8, 4), (4, 16), (16, 16), (16, 4), (4, 8)]
BATCH = 4
D_IN = 8
D_OUT = 8


# ------------------------------ Pallas kernel -------------------------------

def _affine_kernel(x_ref, p_ref, o_ref):
    """out = x @ W_eff + b_eff, done entirely on the VPU.

    x_ref : (BATCH, D_IN)  f32, VMEM
    p_ref : (D_IN + 1, D_OUT) f32, VMEM — rows 0..D_IN-1 = W_eff, row D_IN = b_eff
    o_ref : (BATCH, D_OUT) f32, VMEM
    """
    x = x_ref[...]                                                 # (4, 8)
    # Bias broadcast hoisted once as the accumulator init.
    acc = jnp.broadcast_to(p_ref[D_IN:D_IN + 1, :], (x.shape[0], D_OUT))
    # 8 unrolled VPU FMAs: out += x[:, k] (sublane col) * W_eff[k, :] (lane row).
    # Avoids the MXU push -> result-FIFO pop round trip for a 4x8 operand.
    for k in range(D_IN):
        acc = acc + x[:, k:k + 1] * p_ref[k:k + 1, :]
    o_ref[...] = acc


def _fused_forward(x, packed):
    """x:(B, 8), packed:(9, 8) -> (B, 8); single pallas_call, no grid."""
    vmem = pl.BlockSpec(memory_space=pltpu.MemorySpace.VMEM)  # full array in VMEM
    return pl.pallas_call(
        _affine_kernel,
        out_shape=jax.ShapeDtypeStruct((x.shape[0], D_OUT), jnp.float32),
        in_specs=[vmem, vmem],
        out_specs=vmem,
        cost_estimate=pl.CostEstimate(
            flops=2 * BATCH * D_IN * D_OUT,
            transcendentals=0,
            bytes_accessed=4 * (BATCH * D_IN + (D_IN + 1) * D_OUT + BATCH * D_OUT),
        ),
    )(x, packed)


def make_forward(packed):
    """Close over the pre-staged parameter slab; only x is passed per call."""
    return jax.jit(lambda x: _fused_forward(x, packed))


# ----------------------------- parameter init -------------------------------

def init_params(key):
    """nn.Linear-style init (uniform(-1/sqrt(fan_in), 1/sqrt(fan_in))).

    Weights stored already transposed to (fan_in, fan_out), biases as
    (1, fan_out), matching the PyTorch module's five Linear layers.
    """
    weights, biases = [], []
    for fan_in, fan_out in LAYER_DIMS:
        key, wk, bk = jax.random.split(key, 3)
        bound = 1.0 / math.sqrt(fan_in)
        w = jax.random.uniform(wk, (fan_in, fan_out), jnp.float32, -bound, bound)
        b = jax.random.uniform(bk, (1, fan_out), jnp.float32, -bound, bound)
        weights.append(w)
        biases.append(b)
    return weights, biases


def fold_params(weights, biases):
    """Fold the activation-free 5-Linear chain into one affine map (exact math,
    only fp reassociation), then pack W_eff and b_eff into one (9, 8) slab."""
    w_eff = weights[0]
    b_eff = biases[0]
    for w, b in zip(weights[1:], biases[1:]):
        w_eff = w_eff @ w
        b_eff = b_eff @ w + b
    return jnp.concatenate([w_eff, b_eff], axis=0).astype(jnp.float32)  # (9, 8)


# ---------------------------------- main -------------------------------------

if __name__ == "__main__":
    key = jax.random.PRNGKey(0)
    pkey, xkey = jax.random.split(key)

    weights, biases = init_params(pkey)
    packed = jax.device_put(fold_params(weights, biases))   # one 288-byte slab
    forward = make_forward(packed)

    # get_input(): torch.rand(4, 8)  -> deterministic uniform input here.
    x = jax.random.uniform(xkey, (BATCH, D_IN), jnp.float32)

    out = jax.block_until_ready(forward(x))

    assert out.shape == (BATCH, D_OUT), out.shape
    assert out.dtype == jnp.float32
    assert bool(jnp.all(jnp.isfinite(out)))

    # Reference check: plain-JAX layer-by-layer chain of the same five linears.
    # (Folding reorders f32 accumulation -> differences are ~1e-6, within tol.)
    ref = x
    for w, b in zip(weights, biases):
        ref = ref @ w + b
    assert bool(jnp.allclose(out, ref, atol=1e-5, rtol=1e-5))

    # TODO(synk): FSDP/process-group wrapping is distributed orchestration with no
    # compute semantics in forward(); it is intentionally not modeled here.
    print("KERNEL_OK")
</pallas_src>

<mosaic_0001>
module attributes {stable_mosaic.version = 11 : i64} {
  func.func @_affine_kernel(%arg0: memref<4x8xf32, #tpu.memory_space<vmem>>, %arg1: memref<9x8xf32, #tpu.memory_space<vmem>>, %arg2: memref<4x8xf32, #tpu.memory_space<vmem>>) attributes {dimension_semantics = [], scalar_prefetch = 0 : i64, scratch_operands = 0 : i64, tpu.core_type = #tpu.core_type<tc>} {
    %c0 = arith.constant 0 : index
    %c0_0 = arith.constant 0 : index
    %0 = vector.load %arg0[%c0, %c0_0] : memref<4x8xf32, #tpu.memory_space<vmem>>, vector<4x8xf32>
    %c8 = arith.constant 8 : index
    %c0_1 = arith.constant 0 : index
    %1 = vector.load %arg1[%c8, %c0_1] : memref<9x8xf32, #tpu.memory_space<vmem>>, vector<1x8xf32>
    %2 = vector.shape_cast %1 : vector<1x8xf32> to vector<1x8xf32>
    %3 = vector.broadcast %2 : vector<1x8xf32> to vector<4x8xf32>
    %4 = vector.extract_strided_slice %0 {offsets = [0, 0], sizes = [4, 1], strides = [1, 1]} : vector<4x8xf32> to vector<4x1xf32>
    %c0_2 = arith.constant 0 : index
    %c0_3 = arith.constant 0 : index
    %5 = vector.load %arg1[%c0_2, %c0_3] : memref<9x8xf32, #tpu.memory_space<vmem>>, vector<1x8xf32>
    %6 = vector.broadcast %4 : vector<4x1xf32> to vector<4x8xf32>
    %7 = vector.broadcast %5 : vector<1x8xf32> to vector<4x8xf32>
    %8 = arith.mulf %6, %7 : vector<4x8xf32>
    %9 = arith.addf %3, %8 : vector<4x8xf32>
    %10 = vector.extract_strided_slice %0 {offsets = [0, 1], sizes = [4, 1], strides = [1, 1]} : vector<4x8xf32> to vector<4x1xf32>
    %c1 = arith.constant 1 : index
    %c0_4 = arith.constant 0 : index
    %11 = vector.load %arg1[%c1, %c0_4] : memref<9x8xf32, #tpu.memory_space<vmem>>, vector<1x8xf32>
    %12 = vector.broadcast %10 : vector<4x1xf32> to vector<4x8xf32>
    %13 = vector.broadcast %11 : vector<1x8xf32> to vector<4x8xf32>
    %14 = arith.mulf %12, %13 : vector<4x8xf32>
    %15 = arith.addf %9, %14 : vector<4x8xf32>
    %16 = vector.extract_strided_slice %0 {offsets = [0, 2], sizes = [4, 1], strides = [1, 1]} : vector<4x8xf32> to vector<4x1xf32>
    %c2 = arith.constant 2 : index
    %c0_5 = arith.constant 0 : index
    %17 = vector.load %arg1[%c2, %c0_5] : memref<9x8xf32, #tpu.memory_space<vmem>>, vector<1x8xf32>
    %18 = vector.broadcast %16 : vector<4x1xf32> to vector<4x8xf32>
    %19 = vector.broadcast %17 : vector<1x8xf32> to vector<4x8xf32>
    %20 = arith.mulf %18, %19 : vector<4x8xf32>
    %21 = arith.addf %15, %20 : vector<4x8xf32>
    %22 = vector.extract_strided_slice %0 {offsets = [0, 3], sizes = [4, 1], strides = [1, 1]} : vector<4x8xf32> to vector<4x1xf32>
    %c3 = arith.constant 3 : index
    %c0_6 = arith.constant 0 : index
    %23 = vector.load %arg1[%c3, %c0_6] : memref<9x8xf32, #tpu.memory_space<vmem>>, vector<1x8xf32>
    %24 = vector.broadcast %22 : vector<4x1xf32> to vector<4x8xf32>
    %25 = vector.broadcast %23 : vector<1x8xf32> to vector<4x8xf32>
    %26 = arith.mulf %24, %25 : vector<4x8xf32>
    %27 = arith.addf %21, %26 : vector<4x8xf32>
    %28 = vector.extract_strided_slice %0 {offsets = [0, 4], sizes = [4, 1], strides = [1, 1]} : vector<4x8xf32> to vector<4x1xf32>
    %c4 = arith.constant 4 : index
    %c0_7 = arith.constant 0 : index
    %29 = vector.load %arg1[%c4, %c0_7] : memref<9x8xf32, #tpu.memory_space<vmem>>, vector<1x8xf32>
    %30 = vector.broadcast %28 : vector<4x1xf32> to vector<4x8xf32>
    %31 = vector.broadcast %29 : vector<1x8xf32> to vector<4x8xf32>
    %32 = arith.mulf %30, %31 : vector<4x8xf32>
    %33 = arith.addf %27, %32 : vector<4x8xf32>
    %34 = vector.extract_strided_slice %0 {offsets = [0, 5], sizes = [4, 1], strides = [1, 1]} : vector<4x8xf32> to vector<4x1xf32>
    %c5 = arith.constant 5 : index
    %c0_8 = arith.constant 0 : index
    %35 = vector.load %arg1[%c5, %c0_8] : memref<9x8xf32, #tpu.memory_space<vmem>>, vector<1x8xf32>
    %36 = vector.broadcast %34 : vector<4x1xf32> to vector<4x8xf32>
    %37 = vector.broadcast %35 : vector<1x8xf32> to vector<4x8xf32>
    %38 = arith.mulf %36, %37 : vector<4x8xf32>
    %39 = arith.addf %33, %38 : vector<4x8xf32>
    %40 = vector.extract_strided_slice %0 {offsets = [0, 6], sizes = [4, 1], strides = [1, 1]} : vector<4x8xf32> to vector<4x1xf32>
    %c6 = arith.constant 6 : index
    %c0_9 = arith.constant 0 : index
    %41 = vector.load %arg1[%c6, %c0_9] : memref<9x8xf32, #tpu.memory_space<vmem>>, vector<1x8xf32>
    %42 = vector.broadcast %40 : vector<4x1xf32> to vector<4x8xf32>
    %43 = vector.broadcast %41 : vector<1x8xf32> to vector<4x8xf32>
    %44 = arith.mulf %42, %43 : vector<4x8xf32>
    %45 = arith.addf %39, %44 : vector<4x8xf32>
    %46 = vector.extract_strided_slice %0 {offsets = [0, 7], sizes = [4, 1], strides = [1, 1]} : vector<4x8xf32> to vector<4x1xf32>
    %c7 = arith.constant 7 : index
    %c0_10 = arith.constant 0 : index
    %47 = vector.load %arg1[%c7, %c0_10] : memref<9x8xf32, #tpu.memory_space<vmem>>, vector<1x8xf32>
    %48 = vector.broadcast %46 : vector<4x1xf32> to vector<4x8xf32>
    %49 = vector.broadcast %47 : vector<1x8xf32> to vector<4x8xf32>
    %50 = arith.mulf %48, %49 : vector<4x8xf32>
    %51 = arith.addf %45, %50 : vector<4x8xf32>
    %c0_11 = arith.constant 0 : index
    %c0_12 = arith.constant 0 : index
    %52 = vector.load %arg2[%c0_11, %c0_12] : memref<4x8xf32, #tpu.memory_space<vmem>>, vector<4x8xf32>
    tpu.vector_store %arg2[%c0_11, %c0_12], %51 {strides = array<i32>} : memref<4x8xf32, #tpu.memory_space<vmem>>, vector<4x8xf32>,
    return
  }
}

</mosaic_0001>

<bundles_post_ra>
// kernel: _lambda_.1
= control target key start
LH: loop header
LB: loop body
LE: loop exit
PB: predicated region body
PF: predicated region fallthrough
CT: control target
= control target key end

     0   :  { %7 = vsyncpa [#allocation3], 0  ;;  %s325_s0 = inlined_call_operand.hbm [shape: f32[4,8], index: 0, kind: input, shape index: {}]   ;;  %s326_s1 = inlined_call_operand.hbm [shape: f32[9,8], index: 1, kind: input, shape index: {}]   ;;  %s327_s2 = inlined_call_operand.hbm [shape: f32[4,8], index: 2, kind: output, shape index: {}]  }
   0x1   :  { %8 = vsyncpa [#allocation6], 0 }
   0x2   :  { %9 = vsyncpa [#allocation4], 0  ;;  %s254_s9 = smov [#allocation2]   ;;  %s255_s11 = smov [#allocation5]  }
   0x3   :  { %s16_s10 = sshll.u32 %s254_s9, 4  ;;  %s25_s12 = sshll.u32 %s255_s11, 4  ;;  %s17_s10 = int_to_ptr.vmem [resolvable:$true] %s16_s10  ;;  %s282_s12 = int_to_ptr.vmem [resolvable:$true] %s25_s12 }
   0x4   :  { %s182_s15 = scalar_lea.hbm %s325_s0, 64 }
   0x5   :  { %p183_p0 = scmp.ne.s32.totalorder %s325_s0, %s182_s15  ;;  %p186_p1 = scmp.lt.u32.totalorder %s182_s15, %s325_s0 }
   0x7   :  { %p188_p2 = pnand %p186_p1, %p183_p0 }
   0x9   :  { %191 = shalt.err (!%p188_p2)
}
   0xa   :  { %s192_s20 = scalar_lea.vmem %s17_s10, 64  ;;  %p197_p4 = scmp.lt.s32.totalorder %s17_s10, %s17_s10 }
   0xb   :  { %p193_p3 = scmp.ne.s32.totalorder %s17_s10, %s192_s20  ;;  %p198_p5 = scmp.lt.s32.totalorder %s192_s20, %s192_s20 }
   0xd   :  { %p199_p6 = por %p198_p5, %p197_p4 }
   0xf   :  { %p200_p7 = pnand %p199_p6, %p193_p3 }
  0x11   :  { %203 = shalt.err (!%p200_p7)
}
  0x12   :  { %19 = dma.hbm_to_vmem [thread:$0]  %s325_s0, 64, %s17_s10, [#allocation3]  }
  0x13   :  { %s204_s25 = scalar_lea.hbm %s326_s1, 256 }
  0x14   :  { %p205_p8 = scmp.ne.s32.totalorder %s326_s1, %s204_s25  ;;  %p208_p9 = scmp.lt.u32.totalorder %s204_s25, %s326_s1 }
  0x16   :  { %p210_p10 = pnand %p208_p9, %p205_p8 }
  0x18   :  { %213 = shalt.err (!%p210_p10)
}
  0x19   :  { %s214_s30 = scalar_lea.vmem %s282_s12, 256  ;;  %p219_p12 = scmp.lt.s32.totalorder %s282_s12, %s282_s12 }
  0x1a   :  { %p215_p11 = scmp.ne.s32.totalorder %s282_s12, %s214_s30  ;;  %p220_p13 = scmp.lt.s32.totalorder %s214_s30, %s214_s30 }
  0x1c   :  { %p221_p0 = por %p220_p13, %p219_p12 }
  0x1e   :  { %p222_p1 = pnand %p221_p0, %p215_p11 }
  0x20   :  { %225 = shalt.err (!%p222_p1)
}
  0x21   :  { %s256_s0 = smov 128   ;;  %s257_s3 = smov 8  }
  0x22   :  { %31 = dma.hbm_to_vmem [thread:$0]  %s326_s1, 256, %s282_s12, [#allocation6], %s256_s0, %s256_s0, %s257_s3  }
  0x23   :  { %248 = dma.done.wait [#allocation3], 64  }
  0x24   :  { %249 = vsyncadd [#allocation3], 4294967232 }
  0x25   :  { %250 = dma.done.wait [#allocation6], 256  }
  0x26   :  { %251 = vsyncadd [#allocation6], 4294967040  ;;  %v258_v0 = vmov 2   ;;  %v259_v1 = vmov 0   ;;  %v38_v2 = vld [vmem:[#allocation2] sm:$0xf] }
  0x27   :  { %175 = vset.pattern.permute.xlu1 %v258_v0  ;;  %173 = vset.pattern.permute.xlu0 %v259_v1  ;;  %v260_v3 = vmov 3   ;;  %v261_v4 = vmov 1   ;;  %v262_v5 = vmov 4   ;;  %v263_v6 = vmov 5   ;;  %v152_v9 = vld [vmem:[#allocation5] ss:$0 sm:$0xff] }
  0x28   :  { %69 = vperm.xlu1 %175, %v38_v2   ;;  %47 = vperm.xlu0 %173, %v38_v2   ;;  %v264_v7 = vmov 6   ;;  %v265_v8 = vmov 7   ;;  %v151_v12 = vld [vmem:[#allocation5 + $0x8] ss:$0 sm:$0xff]  ;;  %v153_v14 = vld [vmem:[#allocation5 + $0x1] ss:$0 sm:$0xff] }
  0x29   :  { %v154_v16 = vld [vmem:[#allocation5 + $0x2] ss:$0 sm:$0xff]  ;;  %v155_v20 = vld [vmem:[#allocation5 + $0x3] ss:$0 sm:$0xff]  ;;  %v156_v23 = vld [vmem:[#allocation5 + $0x4] ss:$0 sm:$0xff] }
  0x2a   :  { %v157_v27 = vld [vmem:[#allocation5 + $0x5] ss:$0 sm:$0xff]  ;;  %v158_v33 = vld [vmem:[#allocation5 + $0x6] ss:$0 sm:$0xff]  ;;  %v159_v37 = vld [vmem:[#allocation5 + $0x7] ss:$0 sm:$0xff] }
  0x2b   :  { %s266_s1 = smov [#allocation7]   ;;  %vm133_vm0 = vcmask 60416  }
  0x2c   :  { %176 = vset.pattern.permute.xlu1 %v260_v3  ;;  %174 = vset.pattern.permute.xlu0 %v261_v4  ;;  %s141_s6 = sshll.u32 %s266_s1, 4  ;;  %s142_s6 = int_to_ptr.vmem [resolvable:$true] %s141_s6 }
  0x2d   :  { %80 = vperm.xlu1 %176, %v38_v2   ;;  %58 = vperm.xlu0 %174, %v38_v2   ;;  %s226_s7 = scalar_lea.vmem %s142_s6, 64  ;;  %p231_p3 = scmp.lt.s32.totalorder %s142_s6, %s142_s6 }
  0x2e   :  { %p227_p2 = scmp.ne.s32.totalorder %s142_s6, %s226_s7  ;;  %p232_p4 = scmp.lt.s32.totalorder %s226_s7, %s226_s7 }
  0x30   :  { %p233_p5 = por %p232_p4, %p231_p3 }
  0x31   :  { %177 = vset.pattern.permute.xlu1 %v262_v5  ;;  %178 = vset.pattern.permute.xlu0 %v263_v6 }
  0x32   :  { %91 = vperm.xlu1 %177, %v38_v2   ;;  %102 = vperm.xlu0 %178, %v38_v2   ;;  %p234_p6 = pnand %p233_p5, %p227_p2 }
  0x36   :  { %179 = vset.pattern.permute.xlu1 %v264_v7  ;;  %181 = vset.pattern.permute.xlu0 %v265_v8 }
  0x37   :  { %113 = vperm.xlu1 %179, %v38_v2  }
  0x3b   :  { %180 = vset.pattern.permute.xlu1 %v265_v8 }
  0x3c   :  { %124 = vperm.xlu1 %180, %v38_v2  }
  0xa7   :  { %v70_v10 = vpop.permute.xlu1 %69  ;;  %v48_v11 = vpop.permute.xlu0 %47 }
  0xa8   :  { %v54_v13 = vmul.f32 %v152_v9, %v48_v11  ;;  %v76_v21 = vmul.f32 %v154_v16, %v70_v10 }
  0xaa   :  { %v55_v15 = vadd.f32 %v151_v12, %v54_v13 }
  0xac   :  { %v81_v17 = vpop.permute.xlu1 %80  ;;  %v59_v18 = vpop.permute.xlu0 %58 }
  0xad   :  { %v65_v19 = vmul.f32 %v153_v14, %v59_v18  ;;  %v87_v24 = vmul.f32 %v155_v20, %v81_v17 }
  0xaf   :  { %v66_v22 = vadd.f32 %v65_v19, %v55_v15 }
  0xb1   :  { %v77_v25 = vadd.f32 %v76_v21, %v66_v22  ;;  %v92_v26 = vpop.permute.xlu1 %91  ;;  %v103_v28 = vpop.permute.xlu0 %102 }
  0xb2   :  { %v98_v29 = vmul.f32 %v156_v23, %v92_v26  ;;  %v109_v31 = vmul.f32 %v157_v27, %v103_v28 }
  0xb3   :  { %v88_v30 = vadd.f32 %v87_v24, %v77_v25 }
  0xb5   :  { %v99_v32 = vadd.f32 %v98_v29, %v88_v30 }
  0xb6   :  { %v114_v34 = vpop.permute.xlu1 %113 }
  0xb7   :  { %v110_v35 = vadd.f32 %v109_v31, %v99_v32  ;;  %v120_v36 = vmul.f32 %v158_v33, %v114_v34 }
  0xb9   :  { %v121_v39 = vadd.f32 %v120_v36, %v110_v35 }
  0xbb   :  { %v125_v38 = vpop.permute.xlu1 %124 }
  0xbc   :  { %v131_v40 = vmul.f32 %v159_v37, %v125_v38 }
  0xbe   :  { %v132_v41 = vadd.f32 %v131_v40, %v121_v39 }
  0xc0   :  { %134 = vst.msk [vmem:[#allocation7] sm:$0xf] %vm133_vm0, %v132_v41 }
  0xc1   :  { %237 = shalt.err (!%p234_p6)
}
  0xc2   :  { %s238_s10 = scalar_lea.hbm %s327_s2, 64 }
  0xc3   :  { %p239_p7 = scmp.ne.s32.totalorder %s327_s2, %s238_s10  ;;  %p242_p8 = scmp.lt.u32.totalorder %s238_s10, %s327_s2 }
  0xc5   :  { %p244_p9 = pnand %p242_p8, %p239_p7 }
  0xc7   :  { %247 = shalt.err (!%p244_p9)
}
  0xc8   :  { %144 = dma.vmem_to_hbm [thread:$0]  %s142_s6, 64, %s327_s2, [#allocation4]  }
  0xc9   :  { %252 = dma.done.wait [#allocation4], 64  }
  0xca   :  { %253 = vsyncadd [#allocation4], 4294967232 }
  0xcb   :  { %148 = vsyncpa [#allocation3], 1 }
  0xcc   :  { %149 = vsyncpa [#allocation6], 1 }
  0xcd   :  { %150 = vsyncpa [#allocation4], 1 }

</bundles_post_ra>
